<compile_context>
chip_gen: v6e
topology: v6e:2x2x1
jax: 0.10.0
libtpu: 0.0.40
codegen_flags: <defaults>
</compile_context>

<pallas_src>
import functools

import jax
import jax.numpy as jnp
from jax import lax
from jax.experimental import pallas as pl
from jax.experimental.pallas import tpu as pltpu


def _convblock_kernel(x_ref, w_ref, b_ref, o_ref, halo_ref, *,
                      K, C_half, has_downsample, matmul_dtype):
    """One (batch element, time tile) per grid step.

    x_ref    : (C_in, T_tile)   input tile, NCL layout (time on lanes)
    w_ref    : (K, R, C_in)     per-tap weights; R = C_out (+ C_half if downsample;
                                those extra rows are nonzero only on the last tap)
    b_ref    : (R, 1)           fused bias (conv bias [+ downsample bias]), f32
    o_ref    : (C_half, T_tile) output tile
    halo_ref : (C_in, K-1)      VMEM carry: last K-1 input columns of the previous
                                time tile (causal halo); zeroed at t == 0
    """
    t = pl.program_id(1)
    C_in, T_tile = x_ref.shape
    R = w_ref.shape[1]

    @pl.when(t == 0)
    def _():
        halo_ref[...] = jnp.zeros_like(halo_ref)

    x = x_ref[...]                                                 # (C_in, T_tile)

    # Causal window [halo | x] -> (C_in, T_tile + K - 1); one register-level concat,
    # no (K*C_in, T) im2col buffer.
    xw = jnp.concatenate([halo_ref[...], x], axis=1).astype(matmul_dtype)

    # Carry the last K-1 *real* samples into the next time tile (halo read above).
    halo_ref[...] = x[:, T_tile - (K - 1):]

    # Tap-decomposed conv (+ downsample folded into the last tap's rows):
    #   acc[r, tt] = sum_j w[j, r, :] . xw[:, tt + j]
    # NOTE: for C_in >= ~128 prefer a single fused im2col matmul to fill the MXU;
    # at small C_in the kernel is memory-bound and this avoids the im2col copies.
    acc = jnp.zeros((R, T_tile), jnp.float32)
    for j in range(K):                       # K is small & static (typically 3)
        acc += jnp.dot(w_ref[j], xw[:, j:j + T_tile],
                       preferred_element_type=jnp.float32)
    acc += b_ref[...]                        # single (R,1)->(R,T_tile) broadcast per tile

    # Dropout is identity in eval mode.
    # TODO(synk): training-mode dropout (RNG mask + 1/(1-p) scaling) not implemented.
    glu = acc[:C_half, :] * jax.nn.sigmoid(acc[C_half:2 * C_half, :])   # f32 epilogue

    if has_downsample:
        identity = acc[2 * C_half:, :]                           # fused downsample rows
    else:
        identity = x.astype(jnp.float32)                         # C_in == C_half

    o_ref[...] = (glu + identity).astype(o_ref.dtype)


def conv_block_forward(x_ncl, conv_w, conv_b, ds_w, ds_b, kernel_size, *,
                       time_tile=512, matmul_dtype=jnp.float32):
    """x_ncl: (B, C_in, T).  Returns (B, C_out//2, T) like the PyTorch module (eval)."""
    B, C_in, T = x_ncl.shape
    C_out, _, K = conv_w.shape
    assert K == kernel_size and K >= 2
    C_half = C_out // 2
    assert T >= K - 1
    has_ds = (C_in != C_half)        # static, mirrors the PyTorch shape check

    # ---- fold weights once (weight-sized host-side ops, no activation passes) ----
    w_taps = jnp.transpose(conv_w, (2, 0, 1)).astype(jnp.float32)       # (K, C_out, C_in)
    if has_ds:
        ds_block = jnp.zeros((K, C_half, C_in), jnp.float32).at[K - 1].set(
            ds_w.astype(jnp.float32))                                   # only last tap
        w_big = jnp.concatenate([w_taps, ds_block], axis=1)             # (K, R, C_in)
        b_big = jnp.concatenate([conv_b.astype(jnp.float32),
                                 ds_b.astype(jnp.float32)]).reshape(-1, 1)
    else:
        w_big = w_taps                                                   # (K, C_out, C_in)
        b_big = conv_b.astype(jnp.float32).reshape(-1, 1)
    R = w_big.shape[1]
    w_big = w_big.astype(matmul_dtype)       # bf16 recommended on v6e/v7x

    # ---- time tiling (lane axis) ----
    if T <= time_tile:
        T_tile, T_pad = T, T                 # single tile: block == full time axis
    else:
        assert time_tile % 128 == 0 and time_tile >= K - 1
        T_tile = time_tile
        T_pad = -(-T // T_tile) * T_tile     # trailing zero-pad; extra outputs cropped
    x_in = x_ncl if T_pad == T else jnp.pad(x_ncl, ((0, 0), (0, 0), (0, T_pad - T)))
    n_t = T_pad // T_tile
    grid = (B, n_t)                          # batch parallel, time sequential (halo carry)

    # ---- explicit VMEM budget (v7x has only 64 MiB physical / 32 MiB scoped default) ----
    isz_x = jnp.dtype(x_ncl.dtype).itemsize
    isz_w = jnp.dtype(matmul_dtype).itemsize
    vmem_est = (2 * C_in * T_tile * isz_x          # x, double-buffered
                + 2 * C_half * T_tile * isz_x      # out, double-buffered
                + K * R * C_in * isz_w + 4 * R     # resident weights + bias
                + C_in * (K - 1) * isz_x           # halo scratch
                + 3 * R * T_tile * 4)              # f32 acc / GLU working set
    vmem_limit = int(min(max(4 * vmem_est, 16 * 2 ** 20), 48 * 2 ** 20))

    kernel = functools.partial(_convblock_kernel, K=K, C_half=C_half,
                               has_downsample=has_ds, matmul_dtype=matmul_dtype)

    out = pl.pallas_call(
        kernel,
        out_shape=jax.ShapeDtypeStruct((B, C_half, T_pad), x_ncl.dtype),
        grid_spec=pltpu.PrefetchScalarGridSpec(
            num_scalar_prefetch=0,
            grid=grid,
            in_specs=[
                pl.BlockSpec((None, C_in, T_tile), lambda b, t: (b, 0, t)),
                pl.BlockSpec((K, R, C_in), lambda b, t: (0, 0, 0)),   # resident weights
                pl.BlockSpec((R, 1), lambda b, t: (0, 0)),            # resident bias
            ],
            out_specs=pl.BlockSpec((None, C_half, T_tile), lambda b, t: (b, 0, t)),
            scratch_shapes=[pltpu.VMEM((C_in, K - 1), x_ncl.dtype)],   # causal halo carry
        ),
        compiler_params=pltpu.CompilerParams(
            dimension_semantics=("parallel", "arbitrary"),
            vmem_limit_bytes=vmem_limit,
        ),
    )(x_in, w_big, b_big)

    if T_pad != T:
        out = out[:, :, :T]
    return out


def _reference(x_ncl, conv_w, conv_b, ds_w, ds_b, K):
    """Pure-JAX reference mirroring the PyTorch forward (eval mode)."""
    B, C_in, T = x_ncl.shape
    C_out = conv_w.shape[0]
    C_half = C_out // 2
    y = lax.conv_general_dilated(
        x_ncl, conv_w, window_strides=(1,), padding=[(K - 1, K - 1)],
        dimension_numbers=("NCH", "OIH", "NCH"),
    ) + conv_b[None, :, None]
    a, b = y[:, :C_half, :], y[:, C_half:, :]
    y = a * jax.nn.sigmoid(b)
    y = y[:, :, :-(K - 1)]
    if C_in != C_half:
        ident = jnp.einsum("bct,oc->bot", x_ncl, ds_w) + ds_b[None, :, None]
    else:
        ident = x_ncl
    return y + ident


def _make_params(key, input_feat, output_feat, K):
    C_half = output_feat // 2
    k_v, k_g, k_cb, k_dw, k_db = jax.random.split(key, 5)
    # weight_norm(Conv1d): w = g * v / ||v||  (norm over (in_channels, kernel) per out channel)
    v = jax.random.normal(k_v, (output_feat, input_feat, K), dtype=jnp.float32) * 0.1
    g = jax.random.normal(k_g, (output_feat, 1, 1), dtype=jnp.float32) * 0.5 + 1.0
    v_norm = jnp.sqrt(jnp.sum(v * v, axis=(1, 2), keepdims=True))
    conv_w = g * v / v_norm                                   # (C_out, C_in, K)
    conv_b = jax.random.normal(k_cb, (output_feat,), dtype=jnp.float32) * 0.1
    # downsample = nn.Linear(input_feat, output_feat // 2)
    ds_w = jax.random.normal(k_dw, (C_half, input_feat), dtype=jnp.float32) * 0.1
    ds_b = jax.random.normal(k_db, (C_half,), dtype=jnp.float32) * 0.1
    return conv_w, conv_b, ds_w, ds_b


if __name__ == "__main__":
    key = jax.random.PRNGKey(0)
    k1, k2, k3, kx1, kx2, kx3 = jax.random.split(key, 6)

    # Config 1 (downsample residual path): B=2, C_in=4, C_out=16, T=16, K=3.
    B, Cin, Cout, T, K = 2, 4, 16, 16, 3
    Ch = Cout // 2
    x = jax.random.normal(kx1, (B, Cin, T), dtype=jnp.float32)
    cw, cb, dw, db = _make_params(k1, Cin, Cout, K)
    out = jax.block_until_ready(conv_block_forward(x, cw, cb, dw, db, K))
    ref = _reference(x, cw, cb, dw, db, K)
    assert out.shape == (B, Ch, T), out.shape
    assert jnp.allclose(out, ref, atol=1e-5, rtol=1e-5), float(jnp.max(jnp.abs(out - ref)))

    # Config 2 (identity residual path): C_in == C_out // 2.
    B2, Cin2, Cout2 = 2, 8, 16
    Ch2 = Cout2 // 2
    x2 = jax.random.normal(kx2, (B2, Cin2, T), dtype=jnp.float32)
    cw2, cb2, dw2, db2 = _make_params(k2, Cin2, Cout2, K)
    out2 = jax.block_until_ready(conv_block_forward(x2, cw2, cb2, dw2, db2, K))
    ref2 = _reference(x2, cw2, cb2, dw2, db2, K)
    assert out2.shape == (B2, Ch2, T), out2.shape
    assert jnp.allclose(out2, ref2, atol=1e-5, rtol=1e-5), float(jnp.max(jnp.abs(out2 - ref2)))

    # Config 3: multi-tile time axis (exercises halo carry across tiles + tail pad/crop).
    T3 = 320
    x3 = jax.random.normal(kx3, (B, Cin, T3), dtype=jnp.float32)
    cw3, cb3, dw3, db3 = _make_params(k3, Cin, Cout, K)
    out3 = jax.block_until_ready(
        conv_block_forward(x3, cw3, cb3, dw3, db3, K, time_tile=128))
    ref3 = _reference(x3, cw3, cb3, dw3, db3, K)
    assert out3.shape == (B, Ch, T3), out3.shape
    assert jnp.allclose(out3, ref3, atol=1e-5, rtol=1e-5), float(jnp.max(jnp.abs(out3 - ref3)))

    # bf16 MXU operands (v6e/v7x recommendation): f32 accumulate, relaxed tolerance.
    out_bf = jax.block_until_ready(
        conv_block_forward(x, cw, cb, dw, db, K, matmul_dtype=jnp.bfloat16))
    assert jnp.allclose(out_bf, ref, atol=1e-1, rtol=1e-1), float(jnp.max(jnp.abs(out_bf - ref)))

    print("KERNEL_OK")
</pallas_src>

<mosaic_0001>
module attributes {stable_mosaic.version = 11 : i64} {
  func.func @_convblock_kernel(%arg0: i32, %arg1: i32, %arg2: memref<1x4x16xf32, #tpu.memory_space<vmem>>, %arg3: memref<3x24x4xf32, #tpu.memory_space<vmem>>, %arg4: memref<24x1xf32, #tpu.memory_space<vmem>>, %arg5: memref<1x8x16xf32, #tpu.memory_space<vmem>>, %arg6: memref<4x2xf32, #tpu.memory_space<vmem>>) attributes {dimension_semantics = [#tpu.dimension_semantics<parallel>, #tpu.dimension_semantics<arbitrary>], iteration_bounds = array<i64: 2, 1>, scalar_prefetch = 0 : i64, scratch_operands = 1 : i64, tpu.core_type = #tpu.core_type<tc>, window_params = [{transform_indices = @transform_0, window_bounds = array<i64: 1, 4, 16>}, {pipeline_mode = #tpu.pipeline_mode<synchronous>, transform_indices = @transform_1, window_bounds = array<i64: 3, 24, 4>}, {pipeline_mode = #tpu.pipeline_mode<synchronous>, transform_indices = @transform_2, window_bounds = array<i64: 24, 1>}, {transform_indices = @transform_3, window_bounds = array<i64: 1, 8, 16>}]} {
    %c0_i32 = arith.constant 0 : i32
    %0 = arith.cmpi eq, %arg1, %c0_i32 : i32
    %1 = arith.extui %0 : i1 to i32
    %c0_i32_0 = arith.constant 0 : i32
    %2 = arith.cmpi ne, %1, %c0_i32_0 : i32
    scf.if %2 {
      %cst_23 = arith.constant 0.000000e+00 : f32
      %41 = vector.broadcast %cst_23 : f32 to vector<4x2xf32>
      %c0_24 = arith.constant 0 : index
      %c0_25 = arith.constant 0 : index
      %42 = vector.load %arg6[%c0_24, %c0_25] : memref<4x2xf32, #tpu.memory_space<vmem>>, vector<4x2xf32>
      tpu.vector_store %arg6[%c0_24, %c0_25], %41 {strides = array<i32>} : memref<4x2xf32, #tpu.memory_space<vmem>>, vector<4x2xf32>,
    } else {
    }
    %c0 = arith.constant 0 : index
    %c0_1 = arith.constant 0 : index
    %c0_2 = arith.constant 0 : index
    %3 = vector.load %arg2[%c0, %c0_1, %c0_2] : memref<1x4x16xf32, #tpu.memory_space<vmem>>, vector<1x4x16xf32>
    %4 = vector.shape_cast %3 : vector<1x4x16xf32> to vector<4x16xf32>
    %c0_3 = arith.constant 0 : index
    %c0_4 = arith.constant 0 : index
    %5 = vector.load %arg6[%c0_3, %c0_4] : memref<4x2xf32, #tpu.memory_space<vmem>>, vector<4x2xf32>
    %6 = tpu.concatenate %5, %4 in 1 : vector<4x2xf32>, vector<4x16xf32> -> vector<4x18xf32>
    %7 = vector.extract_strided_slice %4 {offsets = [0, 14], sizes = [4, 2], strides = [1, 1]} : vector<4x16xf32> to vector<4x2xf32>
    %c0_5 = arith.constant 0 : index
    %c0_6 = arith.constant 0 : index
    %8 = vector.load %arg6[%c0_5, %c0_6] : memref<4x2xf32, #tpu.memory_space<vmem>>, vector<4x2xf32>
    tpu.vector_store %arg6[%c0_5, %c0_6], %7 {strides = array<i32>} : memref<4x2xf32, #tpu.memory_space<vmem>>, vector<4x2xf32>,
    %cst = arith.constant 0.000000e+00 : f32
    %9 = vector.broadcast %cst : f32 to vector<24x16xf32>
    %c0_7 = arith.constant 0 : index
    %c0_8 = arith.constant 0 : index
    %c0_9 = arith.constant 0 : index
    %10 = vector.load %arg3[%c0_7, %c0_8, %c0_9] : memref<3x24x4xf32, #tpu.memory_space<vmem>>, vector<1x24x4xf32>
    %11 = vector.shape_cast %10 : vector<1x24x4xf32> to vector<24x4xf32>
    %12 = vector.extract_strided_slice %6 {offsets = [0, 0], sizes = [4, 16], strides = [1, 1]} : vector<4x18xf32> to vector<4x16xf32>
    %cst_10 = arith.constant dense<0.000000e+00> : vector<24x16xf32>
    %13 = tpu.matmul %11, %12, %cst_10 {dimension_numbers = #tpu.dot_dimension_numbers<[1], [0], [0], [1], [0, 0, 1, 1], [], []>} : vector<24x4xf32>, vector<4x16xf32>, vector<24x16xf32> -> vector<24x16xf32>
    %14 = arith.addf %9, %13 : vector<24x16xf32>
    %c1 = arith.constant 1 : index
    %c0_11 = arith.constant 0 : index
    %c0_12 = arith.constant 0 : index
    %15 = vector.load %arg3[%c1, %c0_11, %c0_12] : memref<3x24x4xf32, #tpu.memory_space<vmem>>, vector<1x24x4xf32>
    %16 = vector.shape_cast %15 : vector<1x24x4xf32> to vector<24x4xf32>
    %17 = vector.extract_strided_slice %6 {offsets = [0, 1], sizes = [4, 16], strides = [1, 1]} : vector<4x18xf32> to vector<4x16xf32>
    %cst_13 = arith.constant dense<0.000000e+00> : vector<24x16xf32>
    %18 = tpu.matmul %16, %17, %cst_13 {dimension_numbers = #tpu.dot_dimension_numbers<[1], [0], [0], [1], [0, 0, 1, 1], [], []>} : vector<24x4xf32>, vector<4x16xf32>, vector<24x16xf32> -> vector<24x16xf32>
    %19 = arith.addf %14, %18 : vector<24x16xf32>
    %c2 = arith.constant 2 : index
    %c0_14 = arith.constant 0 : index
    %c0_15 = arith.constant 0 : index
    %20 = vector.load %arg3[%c2, %c0_14, %c0_15] : memref<3x24x4xf32, #tpu.memory_space<vmem>>, vector<1x24x4xf32>
    %21 = vector.shape_cast %20 : vector<1x24x4xf32> to vector<24x4xf32>
    %22 = vector.extract_strided_slice %6 {offsets = [0, 2], sizes = [4, 16], strides = [1, 1]} : vector<4x18xf32> to vector<4x16xf32>
    %cst_16 = arith.constant dense<0.000000e+00> : vector<24x16xf32>
    %23 = tpu.matmul %21, %22, %cst_16 {dimension_numbers = #tpu.dot_dimension_numbers<[1], [0], [0], [1], [0, 0, 1, 1], [], []>} : vector<24x4xf32>, vector<4x16xf32>, vector<24x16xf32> -> vector<24x16xf32>
    %24 = arith.addf %19, %23 : vector<24x16xf32>
    %c0_17 = arith.constant 0 : index
    %c0_18 = arith.constant 0 : index
    %25 = vector.load %arg4[%c0_17, %c0_18] : memref<24x1xf32, #tpu.memory_space<vmem>>, vector<24x1xf32>
    %26 = vector.broadcast %25 : vector<24x1xf32> to vector<24x16xf32>
    %27 = arith.addf %24, %26 : vector<24x16xf32>
    %28 = vector.extract_strided_slice %27 {offsets = [0, 0], sizes = [8, 16], strides = [1, 1]} : vector<24x16xf32> to vector<8x16xf32>
    %29 = vector.extract_strided_slice %27 {offsets = [8, 0], sizes = [8, 16], strides = [1, 1]} : vector<24x16xf32> to vector<8x16xf32>
    %30 = arith.negf %29 : vector<8x16xf32>
    %31 = math.exp %30 : vector<8x16xf32>
    %cst_19 = arith.constant 1.000000e+00 : f32
    %32 = vector.broadcast %cst_19 : f32 to vector<8x16xf32>
    %33 = arith.addf %32, %31 : vector<8x16xf32>
    %34 = arith.divf %32, %33 : vector<8x16xf32>
    %35 = arith.mulf %28, %34 : vector<8x16xf32>
    %36 = vector.extract_strided_slice %27 {offsets = [16, 0], sizes = [8, 16], strides = [1, 1]} : vector<24x16xf32> to vector<8x16xf32>
    %37 = arith.addf %35, %36 : vector<8x16xf32>
    %c0_20 = arith.constant 0 : index
    %c0_21 = arith.constant 0 : index
    %c0_22 = arith.constant 0 : index
    %38 = vector.load %arg5[%c0_20, %c0_21, %c0_22] : memref<1x8x16xf32, #tpu.memory_space<vmem>>, vector<1x8x16xf32>
    %39 = vector.shape_cast %38 : vector<1x8x16xf32> to vector<8x16xf32>
    %40 = vector.shape_cast %37 : vector<8x16xf32> to vector<1x8x16xf32>
    tpu.vector_store %arg5[%c0_20, %c0_21, %c0_22], %40 {strides = array<i32>} : memref<1x8x16xf32, #tpu.memory_space<vmem>>, vector<1x8x16xf32>,
    return
  }
  func.func @transform_0(%arg0: i32, %arg1: i32) -> (i32, i32, i32) {
    %c0_i32 = arith.constant 0 : i32
    %c0_i32_0 = arith.constant 0 : i32
    return %arg0, %c0_i32, %arg1 : i32, i32, i32
  }
  func.func @transform_1(%arg0: i32, %arg1: i32) -> (i32, i32, i32) {
    %c0_i32 = arith.constant 0 : i32
    %c0_i32_0 = arith.constant 0 : i32
    %c0_i32_1 = arith.constant 0 : i32
    %c0_i32_2 = arith.constant 0 : i32
    return %c0_i32, %c0_i32_0, %c0_i32_1 : i32, i32, i32
  }
  func.func @transform_2(%arg0: i32, %arg1: i32) -> (i32, i32) {
    %c0_i32 = arith.constant 0 : i32
    %c0_i32_0 = arith.constant 0 : i32
    %c0_i32_1 = arith.constant 0 : i32
    return %c0_i32, %c0_i32_0 : i32, i32
  }
  func.func @transform_3(%arg0: i32, %arg1: i32) -> (i32, i32, i32) {
    %c0_i32 = arith.constant 0 : i32
    %c0_i32_0 = arith.constant 0 : i32
    return %arg0, %c0_i32, %arg1 : i32, i32, i32
  }
}

</mosaic_0001>

<bundles_post_ra>
// kernel: tpu_custom_call.1
= control target key start
LH: loop header
LB: loop body
LE: loop exit
PB: predicated region body
PF: predicated region fallthrough
CT: control target
= control target key end

     0   :  { %8 = vsyncpa [#allocation4], 0  ;;  %s1041_s0 = inlined_call_operand.vmem [shape: f32[2,4,16], index: 0, kind: input, shape index: {}]   ;;  %s1042_s1 = inlined_call_operand.vmem [shape: f32[3,24,4], index: 1, kind: input, shape index: {}]   ;;  %s1043_s2 = inlined_call_operand.vmem [shape: f32[24,1], index: 2, kind: input, shape index: {}]   ;;  %s1044_s3 = inlined_call_operand.hbm [shape: f32[2,8,16], index: 3, kind: output, shape index: {}]  }
   0x1   :  { %10 = vsyncpa [#allocation4 + $0x1], 0  ;;  %s872_s12 = smov 0   ;;  %s874_s13 = smov 0  }
   0x2   :  { %s876_s14 = smov 0   ;;  %s878_s15 = smov 0  }
   0x3   :  { %s880_s16 = smov 0   ;;  %s882_s17 = smov 0  }
   0x4 LB: > { %s621_s18 = sadd.s32 4294967295, %s842_s17   ;;  %s622_s19 = sadd.s32 4294967294, %s842_s17   ;;  %s842_s17 = sphi %s882_s17, %s16_s17   ;;  %s838_s16 = sphi %s880_s16, %s1051_s16   ;;  %s834_s15 = sphi %s878_s15, %s1050_s15   ;;  %s830_s14 = sphi %s876_s14, %s1049_s14   ;;  %s826_s13 = sphi %s874_s13, %s1048_s13   ;;  %s822_s12 = sphi %s872_s12, %s1047_s12  }
   0x5   : > { %s28_s20 = sadd.s32 1, %s838_s16  ;;  %s107_s21 = sadd.s32 1, %s830_s14 }
   0x6   : > { %p30_p0 = scmp.ge.s32.totalorder %s28_s20, 2  ;;  %p117_p1 = scmp.ne.s32.totalorder %s830_s14, %s826_s13 }
   0x7   : > { %p118_p2 = scmp.eq.s32.totalorder %s621_s18, 1  ;;  %p123_p3 = scmp.ne.s32.totalorder %s826_s13, %s822_s12 }
   0x8   : > { %s1053_s20 = smov (%p30_p0, %s28_s20), 0  ;;  %p124_p5 = scmp.eq.s32.totalorder %s622_s19, 1 }
   0x9   : > { %p912_p4 = por %p118_p2, %p117_p1  ;;  %s102_s23 = ssub.s32 %s838_s16, %s1053_s20 }
   0xa   : > { %p625_p6 = scmp.ge.s32.totalorder %s842_s17, 1  ;;  %p105_p7 = scmp.eq.s32.totalorder %s102_s23, 0 }
   0xb   : > { %p919_p8 = por %p124_p5, %p123_p3  ;;  %p158_p9 = scmp.lt.s32.totalorder %s842_s17, 3 }
   0xc   : > { %s925_s25 = scalar_select %p105_p7, %s830_s14, %s107_s21  }
   0xd   : > { %p159_p10 = pnand %p625_p6, %p158_p9 }
   0xe   : > { %p184_p11 = scmp.lt.s32.totalorder (!%p159_p10), %s834_s15, 1  ;;  %s845_s4 = smov (!%p159_p10), 2  }
   0xf   : > { %162 = sbr.rel (%p159_p10) target bundleno = 517 (0x205), region = 32  ;;  %s847_s5 = smov (!%p159_p10), 126  }
  0x10   : > { %s848_s6 = smov (!%p159_p10), 127   ;;  %s850_s19 = smov (!%p159_p10), 114  }
  0x11   : > { %s181_s23 = sand.u32 (!%p159_p10), 1, %s826_s13   ;;  %s851_s8 = smov (!%p159_p10), [#allocation3]  }
  0x14   : > { %vm195_vm0 = vcmask 11264   ;;  %v844_v0 = vmov 0.0   ;;  %s185_s26 = scalar_select %p184_p11, %s834_s15, 1  ;;  %vm846_vm1 = vmmov 0   ;;  %vm203_vm2 = vcmask 15360   ;;  %v504_v5 = vld [vmem:[%s1043_s2] sm:$0xff] }
  0x15   : > { %196 = vst.msk [vmem:[#allocation2] sm:$0xf] %vm195_vm0, %v844_v0  ;;  %663 = vmatprep.subr.mxu0 %v844_v0  ;;  %696 = vmatprep.subr.mxu1 %v844_v0  ;;  %v505_v6 = vld [vmem:[%s1043_s2 + $0x8] sm:$0xff]  ;;  %v849_v7 = vmov 0   ;;  %v506_v8 = vld [vmem:[%s1043_s2 + $0x10] sm:$0xff]  ;;  %vm230_vm3 = vcmask 1043456  }
  0x16   : > { %s627_s27 = sshll.u32 %s185_s26, 2  ;;  %668 = vmatprep.mubr.msk.f32.mxu1 %vm846_vm1, %v844_v0  ;;  %665 = vmatprep.mubr.msk.f32.mxu0 %vm846_vm1, %v844_v0  ;;  %v629_v9 = vld [vmem:[%s1042_s1 + $0x20] sm:$0xff]  ;;  %vm220_vm4 = vcmask 31744   ;;  %v628_v11 = vld [vmem:[%s1042_s1 + $0x18] sm:$0xff]  ;;  %v630_v13 = vld [vmem:[%s1042_s1 + $0x28] sm:$0xff]  ;;  %s626_s26 = sshll.u32 %s181_s23, 3 }
  0x17   : > { %s190_s30 = scalar_lea.vmem %s1041_s0, %s627_s27  ;;  %761 = vset.pattern.permute.xlu0 %v849_v7  ;;  %760 = vset.pattern.permute.xlu1 %v849_v7  ;;  %v639_v14 = vld [vmem:[%s1042_s1 + $0x30] sm:$0xff]  ;;  %v210_v15 = vld [vmem:[%s1042_s1] sm:$0xff]  ;;  %v640_v16 = vld [vmem:[%s1042_s1 + $0x38] sm:$0xff]  ;;  %s648_s27 = sshll.u32 %s834_s15, 7  ;;  %vm533_vm5 = vcmask 130048  }
  0x18   : > { %v197_v1 = vld [vmem:[%s190_s30] sm:$0xf]  ;;  %v211_v17 = vld [vmem:[%s1042_s1 + $0x8] sm:$0xff]  ;;  %v212_v19 = vld [vmem:[%s1042_s1 + $0x10] sm:$0xff]  ;;  %s183_s28 = scalar_lea.vmem [#allocation3], %s626_s26  ;;  %s770_s15 = sshll.u32 %s851_s8, 4  ;;  %s771_s15 = int_to_ptr.vmem [resolvable:$false] %s770_s15 }
  0x19   : > { %200 = vrot.lane.b32.xlu0 %v197_v1, %s845_s4  ;;  %v641_v18 = vld [vmem:[%s1042_s1 + $0x40] sm:$0xff]  ;;  %s550_s29 = sshll.u32 %s183_s28, 4  ;;  %s772_s9 = scalar_lea.vmem %s771_s15, 256  ;;  %s551_s29 = int_to_ptr.vmem [resolvable:$true] %s550_s29 }
  0x1a   : > { %s766_s7 = scalar_lea.vmem %s551_s29, 128  ;;  %p773_p1 = scmp.lt.s32.totalorder %s551_s29, %s771_s15 }
  0x1b   : > { %p767_p12 = scmp.ne.s32.totalorder %s551_s29, %s766_s7  ;;  %p774_p2 = scmp.lt.s32.totalorder %s772_s9, %s766_s7 }
  0x1c   : > { %v198_v2 = vld [vmem:[#allocation2] sm:$0xf] }
  0x1d   : > { %p768_p13 = pnand %p767_p12, %p912_p4  ;;  %p775_p3 = por %p774_p2, %p773_p1 }
  0x1f   : > { %p769_p0 = pneg %p768_p13 }
  0x21   : > { %p776_p5 = pnand %p775_p3, %p769_p0 }
  0x8b   : > { %v201_v3 = vpop.permute.xlu0 %200 }
  0x8c   : > { %v204_v4 = vsel %vm203_vm2, %v198_v2, %v201_v3 }
  0x8d   : > { %408 = vrot.lane.b32.xlu1 %v204_v4, %s847_s5  ;;  %218 = vrot.lane.b32.xlu0 %v204_v4, %s848_s6  ;;  %s548_s5 = scalar_lea.hbm %s1044_s3, %s648_s27  ;;  %s536_s6 = scalar_lea.sflag [#allocation4], %s181_s23 }
  0x91   : > { %509 = vperm.xlu0 %761, %v504_v5   ;;  %514 = vperm.xlu1 %760, %v505_v6  }
  0x95   : > { %519 = vperm.xlu1 %760, %v506_v8  }
  0x99   : > { %205 = vrot.lane.b32.xlu1 %v197_v1, %s850_s19 }
  0xff   : > { %v219_v10 = vpop.permute.xlu0 %218  ;;  %v409_v12 = vpop.permute.xlu1 %408 }
 0x100   : > { %664 = vmatpush3.msk.msra.mxu0 %vm230_vm3, %v219_v10  ;;  %697 = vmatpush3.msk.msra.mxu1 %vm230_vm3, %v219_v10 }
 0x101   : > { %669 = vmatmul.mubr.msk.f32.vlgmr.msra.gmra.mxu1 %vm220_vm4, %v629_v9  ;;  %674 = vmatprep.subr.mxu1 %v844_v0 }
 0x102   : > { %685 = vmatprep.subr.mxu0 %v844_v0  ;;  %666 = vmatmul.mubr.msk.f32.vlgmr.msra.gmra.mxu0 %vm220_vm4, %v628_v11 }
 0x103   : > { %675 = vmatpush3.msk.msra.mxu1 %vm230_vm3, %v204_v4  ;;  %686 = vmatpush3.msk.msra.mxu0 %vm230_vm3, %v409_v12 }
 0x104   : > { %671 = vmatprep.mubr.msk.f32.mxu1 %vm846_vm1, %v844_v0  ;;  %687 = vmatprep.mubr.msk.f32.mxu0 %vm846_vm1, %v844_v0 }
 0x105   : > { %672 = vmatmul.mubr.msk.f32.gmra.mxu1 %vm220_vm4, %v630_v13 }
 0x106   : > { %676 = vmatprep.mubr.msk.f32.mxu1 %vm846_vm1, %v844_v0  ;;  %688 = vmatmul.mubr.msk.f32.vlgmr.msra.gmra.mxu0 %vm220_vm4, %v639_v14 }
 0x107   : > { %690 = vmatprep.mubr.msk.f32.mxu0 %vm846_vm1, %v844_v0 }
 0x109   : > { %677 = vmatmul.mubr.msk.f32.vlgmr.msra.gmra.mxu1 %vm220_vm4, %v210_v15 }
 0x10a   : > { %679 = vmatprep.mubr.msk.f32.mxu1 %vm846_vm1, %v844_v0  ;;  %691 = vmatmul.mubr.msk.f32.gmra.mxu0 %vm220_vm4, %v640_v16 }
 0x10b   : > { %693 = vmatprep.mubr.msk.f32.mxu0 %vm846_vm1, %v844_v0 }
 0x10c   : > { %v515_v20 = vpop.permute.xlu1 %514  ;;  %v510_v50 = vpop.permute.xlu0 %509 }
 0x10d   : > { %680 = vmatmul.mubr.msk.f32.gmra.mxu1 %vm220_vm4, %v211_v17 }
 0x10e   : > { %682 = vmatprep.mubr.msk.f32.mxu1 %vm846_vm1, %v844_v0  ;;  %694 = vmatmul.mubr.msk.f32.gmra.mxu0 %vm220_vm4, %v641_v18 }
 0x110   : > { %v520_v21 = vpop.permute.xlu1 %519 }
 0x111   : > { %683 = vmatmul.mubr.msk.f32.gmra.mxu1 %vm220_vm4, %v212_v19 }
 0x114   : > { %v206_v22 = vpop.permute.xlu1 %205 }
 0x115   : > { %209 = vst.msk [vmem:[#allocation2] sm:$0xf] %vm195_vm0, %v206_v22 }
 0x1c1   : > { %v304_v23 = vpop.f32.mrf.mxu1 }
 0x1c2   : > { %v299_v24 = vpop.f32.mrf.mxu0 }
 0x1c3   : > { %v670_v25 = vpop.f32.mrf.mxu1 }
 0x1c4   : > { %v667_v26 = vpop.f32.mrf.mxu0 }
 0x1c5   : > { %v309_v27 = vpop.f32.mrf.mxu1 }
 0x1c6   : > { %v487_v28 = vpop.f32.mrf.mxu0 }
 0x1c7   : > { %v673_v29 = vpop.f32.mrf.mxu1 }
 0x1c8   : > { %v689_v30 = vpop.f32.mrf.mxu0 }
 0x1c9   : > { %v390_v31 = vpop.f32.mrf.mxu1 }
 0x1ca   : > { %v492_v32 = vpop.f32.mrf.mxu0  ;;  %v391_v47 = vadd.f32 %v390_v31, %v299_v24 }
 0x1cb   : > { %v678_v33 = vpop.f32.mrf.mxu1 }
 0x1cc   : > { %v692_v34 = vpop.f32.mrf.mxu0  ;;  %v501_v49 = vadd.f32 %v487_v28, %v391_v47 }
 0x1cd   : > { %v395_v35 = vpop.f32.mrf.mxu1 }
 0x1ce   : > { %v396_v36 = vadd.f32 %v395_v35, %v304_v23  ;;  %v497_v37 = vpop.f32.mrf.mxu0  ;;  %v522_v52 = vadd.f32 %v510_v50, %v501_v49 }
 0x1cf   : > { %v681_v38 = vpop.f32.mrf.mxu1 }
 0x1d0   : > { %v502_v39 = vadd.f32 %v492_v32, %v396_v36  ;;  %v695_v40 = vpop.f32.mrf.mxu0 }
 0x1d1   : > { %v400_v41 = vpop.f32.mrf.mxu1 }
 0x1d2   : > { %v523_v42 = vadd.f32 %v515_v20, %v502_v39  ;;  %v401_v48 = vadd.f32 %v400_v41, %v309_v27 }
 0x1d3   : > { %v684_v43 = vpop.f32.mrf.mxu1 }
 0x1d4   : > { %v646_v44 = vmul.f32 -1.442695, %v523_v42  ;;  %v503_v51 = vadd.f32 %v497_v37, %v401_v48 }
 0x1d6   : > { %762 = vpow2.f32 %v646_v44  ;;  %v524_v54 = vadd.f32 %v520_v21, %v503_v51 }
 0x1e3   : > { %v763_v45 = vpop.eup %762 }
 0x1e4   : > { %v528_v46 = vadd.f32 1.0, %v763_v45 }
 0x1e6   : > { %764 = vrcp.f32 %v528_v46 }
 0x1f3   : > { %v765_v53 = vpop.eup %764 }
 0x1f4   : > { %v531_v55 = vmul.f32 %v765_v53, %v522_v52 }
 0x1f6   : > { %v532_v56 = vadd.f32 %v531_v55, %v524_v54 }
 0x1f8   : > { %534 = vst.msk [vmem:[%s183_s28] sm:$0xff] %vm533_vm5, %v532_v56 }
 0x1f9   : > { %779 = shalt.err (!%p776_p5)
}
 0x1fa   : > { %s780_s10 = scalar_lea.hbm %s548_s5, 128  ;;  %s784_s19 = scalar_lea.hbm %s1044_s3, 256 }
 0x1fb   : > { %p781_p6 = scmp.ne.s32.totalorder %s548_s5, %s780_s10  ;;  %p785_p10 = scmp.lt.s32.totalorder %s548_s5, %s1044_s3 }
 0x1fc   : > { %p786_p11 = scmp.lt.s32.totalorder %s784_s19, %s780_s10 }
 0x1fd   : > { %p782_p7 = pnand %p781_p6, %p912_p4 }
 0x1fe   : > { %p787_p12 = por %p786_p11, %p785_p10 }
 0x1ff   : > { %p783_p9 = pneg %p782_p7 }
 0x201   : > { %p788_p13 = pnand %p787_p12, %p783_p9 }
 0x203   : > { %791 = shalt.err (!%p788_p13)
}
 0x204   : > { %698 = dma.vmem_to_hbm [thread:$0]  (%p912_p4), %s551_s29, 128, %s548_s5, %s536_s6  }
 0x205 PF: > { %p704_p0 = scmp.ge.s32.totalorder %s842_s17, 2  ;;  %s562_s26 = sand.u32 1, %s822_s12  }
 0x206   : > { %s563_s27 = scalar_lea.sflag [#allocation4], %s562_s26 }
 0x207   : > { %p701_p1 = pnand %p704_p0, %p919_p8 }
 0x209   : > { %p702_p2 = pneg %p701_p1 }
 0x20b   : > { %817 = dma.done.wait (%p702_p2), %s563_s27, 128  }
 0x20c   : > { %819 = vsyncadd (%p702_p2), %s563_s27, 4294967168  ;;  %s16_s17 = sadd.s32 1, %s842_s17   ;;  %s1047_s12 = smov %s826_s13 }
 0x20d   : > { %p13_p3 = scmp.ge.s32.totalorder %s16_s17, 4   ;;  %s1048_s13 = smov %s830_s14 }
 0x20e   : > { %s1049_s14 = smov %s925_s25  ;;  %s1050_s15 = smov %s838_s16 }
 0x20f   : > { %s1051_s16 = smov %s1053_s20  ;;  %15 = sbr.rel (!%p13_p3) target bundleno = 4 (0x4), region = 73 }
 0x214   :  { %568 = vsyncpa [#allocation4], 1 }
 0x215   :  { %570 = vsyncpa [#allocation4 + $0x1], 1 }

</bundles_post_ra>
